<compile_context>
chip_gen: v7x
topology: tpu7x:2x2x1
jax: 0.10.0
libtpu: 0.0.40
codegen_flags: <defaults>
</compile_context>

<pallas_src>
import functools

import jax
import jax.numpy as jnp
from jax import lax
from jax.experimental import pallas as pl
from jax.experimental.pallas import tpu as pltpu

ALPHA = 0.95    # synaptic current decay
BETA = 0.85     # membrane decay
THRESH = 1.0    # firing threshold
GROUP = 8       # timesteps per unrolled group (= one f32 sublane tile)


def _round_up(n, m):
    return ((n + m - 1) // m) * m


def _syn_kernel(x_ref, u_ref, w_ref, b_ref, l_ref, apow_ref,
                spk_ref, mem_ref,
                cur_sc, syn_st, mem_st, spk_st):
    # grid = (batch-split, time-chunk); the time-chunk axis carries state.
    b_sub, t_chunk, _ = x_ref.shape
    n_out = w_ref.shape[1]
    c = pl.program_id(1)

    @pl.when(c == 0)
    def _():
        # fresh synaptic / membrane / spike state at the start of each batch split
        syn_st[...] = jnp.zeros_like(syn_st)
        mem_st[...] = jnp.zeros_like(mem_st)
        spk_st[...] = jnp.zeros_like(spk_st)

    # ---- state-independent work for the whole chunk (VPU + MXU) --------------
    # spikegen.rate(x, 1)[0]: Bernoulli spikes with p = clip(x, 0, 1), then fc1.
    # Results are laid out (t_chunk, b_sub*n_out): one row per timestep, every
    # batch element side-by-side on lanes.
    for b in range(b_sub):
        rate_b = (u_ref[b] < jnp.clip(x_ref[b], 0.0, 1.0)).astype(jnp.float32)
        cur_sc[:, b * n_out:(b + 1) * n_out] = (
            jnp.dot(rate_b, w_ref[...], preferred_element_type=jnp.float32)
            + b_ref[...])

    # Hoist the linear synaptic-current recurrence onto the MXU:
    #   syn_t = alpha * syn_{t-1} + fc_t
    #         = alpha^(t+1) * syn_in + sum_{s<=t} alpha^(t-s) * fc_s
    #         = (L @ fc)_t + apow_t * syn_in
    syn_all = (jnp.dot(l_ref[...], cur_sc[...], preferred_element_type=jnp.float32)
               + apow_ref[...] * syn_st[...])
    cur_sc[...] = syn_all                            # reuse fc buffer for syn
    syn_st[...] = syn_all[t_chunk - 1:t_chunk, :]    # carry to next chunk

    # ---- sequential membrane recurrence (all batch elements at once) ---------
    def group_body(g, carry):
        mem, spk = carry                             # (1, b_sub*n_out) each
        base = pl.multiple_of(g * GROUP, GROUP)
        syn_grp = cur_sc[pl.ds(base, GROUP), :]      # one aligned (8, lanes) load
        mem_rows, spk_rows = [], []
        for i in range(GROUP):
            # reset term is (mem_{t-1} > thr) == previous spike (carried)
            mem = BETA * mem + syn_grp[i:i + 1, :] - spk * THRESH
            spk = (mem > THRESH).astype(jnp.float32)
            mem_rows.append(mem)
            spk_rows.append(spk)
        # one store per group per output instead of 8 masked per-step stores
        spk_ref[pl.ds(base, GROUP), :] = jnp.concatenate(spk_rows, axis=0)
        mem_ref[pl.ds(base, GROUP), :] = jnp.concatenate(mem_rows, axis=0)
        return mem, spk

    mem, spk = lax.fori_loop(0, t_chunk // GROUP, group_body,
                             (mem_st[...], spk_st[...]))
    mem_st[...] = mem
    spk_st[...] = spk


@functools.partial(jax.jit, static_argnames=("t_chunk", "n_split"))
def syn_network_forward(x, uniforms, weight, bias, *, t_chunk=None, n_split=1):
    """x, uniforms: (B, T, F); weight: (n_out, F) torch layout; bias: (n_out,).

    Returns (spk_rec, mem_rec), each of shape (T, B, n_out), float32.
    Set n_split=2 on v7x (2 TensorCores/chip) when B is even.
    """
    B, T, F = x.shape
    n_out = weight.shape[0]
    if B % n_split != 0:
        raise ValueError("n_split must divide the batch size")
    b_sub = B // n_split
    lane = b_sub * n_out

    if t_chunk is None:
        t_chunk = min(1024, _round_up(T, GROUP))
        lane_f = _round_up(F, 128)

        def _vmem_bytes(t):
            # x,u blocks (double-buffered) + L matrix + scan scratch + out blocks
            return 4 * (2 * 2 * b_sub * t * lane_f + 2 * t * t
                        + t * 128 + 2 * 2 * t * 128)

        while t_chunk > GROUP and _vmem_bytes(t_chunk) > (20 << 20):
            t_chunk = _round_up(t_chunk // 2, GROUP)
    if t_chunk % GROUP:
        raise ValueError("t_chunk must be a multiple of 8")
    num_chunks = pl.cdiv(T, t_chunk)

    # Native (B, T, F) layout — no wrapper-side pad or transpose of the big inputs.
    x_f = x.astype(jnp.float32)
    u_f = uniforms.astype(jnp.float32)
    w_fc = jnp.transpose(weight).astype(jnp.float32)     # (F, n_out)
    b_fc = bias.reshape(1, n_out).astype(jnp.float32)    # (1, n_out)

    # Lower-triangular alpha-power scan matrix + alpha^(t+1) carry column.
    idx = jnp.arange(t_chunk, dtype=jnp.int32)
    diff = idx[:, None] - idx[None, :]
    l_mat = jnp.where(
        diff >= 0,
        jnp.power(jnp.float32(ALPHA), jnp.maximum(diff, 0).astype(jnp.float32)),
        0.0).astype(jnp.float32)                          # (t_chunk, t_chunk)
    apow = jnp.power(jnp.float32(ALPHA),
                     jnp.arange(1, t_chunk + 1, dtype=jnp.float32)
                     ).reshape(t_chunk, 1)                # (t_chunk, 1)

    grid_spec = pltpu.PrefetchScalarGridSpec(
        num_scalar_prefetch=0,
        grid=(n_split, num_chunks),
        in_specs=[
            pl.BlockSpec((b_sub, t_chunk, F), lambda s, c: (s, c, 0)),   # x
            pl.BlockSpec((b_sub, t_chunk, F), lambda s, c: (s, c, 0)),   # uniforms
            pl.BlockSpec((F, n_out), lambda s, c: (0, 0)),               # fc1 weight
            pl.BlockSpec((1, n_out), lambda s, c: (0, 0)),               # fc1 bias
            pl.BlockSpec((t_chunk, t_chunk), lambda s, c: (0, 0)),       # alpha scan L
            pl.BlockSpec((t_chunk, 1), lambda s, c: (0, 0)),             # alpha^(t+1)
        ],
        out_specs=[
            pl.BlockSpec((None, t_chunk, lane), lambda s, c: (s, c, 0)),  # spk
            pl.BlockSpec((None, t_chunk, lane), lambda s, c: (s, c, 0)),  # mem
        ],
        scratch_shapes=[
            pltpu.VMEM((t_chunk, lane), jnp.float32),   # fc / scanned syn (reused)
            pltpu.VMEM((1, lane), jnp.float32),         # syn carry
            pltpu.VMEM((1, lane), jnp.float32),         # mem carry
            pltpu.VMEM((1, lane), jnp.float32),         # spk carry (reset term)
        ],
    )

    flops = (2 * B * T * F * n_out
             + 2 * n_split * num_chunks * t_chunk * t_chunk * lane
             + 10 * B * T * n_out)
    bytes_accessed = 4 * (2 * B * T * F + 2 * B * T * n_out
                          + F * n_out + t_chunk * t_chunk)
    cost = pl.CostEstimate(flops=int(flops), transcendentals=0,
                           bytes_accessed=int(bytes_accessed))

    spk_out, mem_out = pl.pallas_call(
        _syn_kernel,
        out_shape=(
            jax.ShapeDtypeStruct((n_split, T, lane), jnp.float32),
            jax.ShapeDtypeStruct((n_split, T, lane), jnp.float32),
        ),
        grid_spec=grid_spec,
        compiler_params=pltpu.CompilerParams(
            # batch-split axis is independent (2nd TC on v7x); time chunks carry state
            dimension_semantics=("parallel", "arbitrary")),
        cost_estimate=cost,
    )(x_f, u_f, w_fc, b_fc, l_mat, apow)

    def _unpack(o):  # (n_split, T, b_sub*n_out) -> (T, B, n_out), torch.stack layout
        return (o.reshape(n_split, T, b_sub, n_out)
                 .transpose(1, 0, 2, 3)
                 .reshape(T, B, n_out))

    return _unpack(spk_out), _unpack(mem_out)


def _reference(x, uniforms, weight, bias):
    """Pure-JAX reference of the same forward pass (sequential recurrence)."""
    rate = (uniforms < jnp.clip(x, 0.0, 1.0)).astype(jnp.float32)    # (B, T, F)
    fc = jnp.einsum("btf,of->bto", rate, weight) + bias              # (B, T, 3)
    fc_t = jnp.transpose(fc, (1, 0, 2))                              # (T, B, 3)

    def step(carry, inp):
        syn, mem = carry
        reset = (mem > THRESH).astype(jnp.float32)
        syn_new = ALPHA * syn + inp
        mem_new = BETA * mem + syn_new - reset * THRESH
        spk = (mem_new > THRESH).astype(jnp.float32)
        return (syn_new, mem_new), (spk, mem_new)

    B = x.shape[0]
    n_out = weight.shape[0]
    init = (jnp.zeros((B, n_out), jnp.float32), jnp.zeros((B, n_out), jnp.float32))
    _, (spk_rec, mem_rec) = lax.scan(step, init, fc_t)
    return spk_rec, mem_rec


if __name__ == "__main__":
    # Small shapes consistent with mode='FULL': Linear(100, 3) forces F=100.
    # T=48 with t_chunk=16 exercises the multi-chunk state carry path.
    B, T, F, N_OUT = 2, 48, 100, 3

    key = jax.random.PRNGKey(0)
    kx, ku, kw, kb = jax.random.split(key, 4)

    x = jax.random.uniform(kx, (B, T, F), dtype=jnp.float32)          # intensities
    uniforms = jax.random.uniform(ku, (B, T, F), dtype=jnp.float32)   # rate-coding randoms
    bound = 1.0 / jnp.sqrt(jnp.float32(F))
    weight = jax.random.uniform(kw, (N_OUT, F), minval=-bound, maxval=bound,
                                dtype=jnp.float32)
    bias = jax.random.uniform(kb, (N_OUT,), minval=-bound, maxval=bound,
                              dtype=jnp.float32)

    spk_rec, mem_rec = syn_network_forward(x, uniforms, weight, bias, t_chunk=16)
    jax.block_until_ready((spk_rec, mem_rec))

    spk_ref, mem_ref = _reference(x, uniforms, weight, bias)
    assert spk_rec.shape == (T, B, N_OUT) and mem_rec.shape == (T, B, N_OUT)
    assert jnp.allclose(mem_rec, mem_ref, atol=1e-4), \
        float(jnp.max(jnp.abs(mem_rec - mem_ref)))
    # Spikes are a hard threshold; only tolerate a flip where mem sits on the threshold.
    spk_mismatch = spk_rec != spk_ref
    near_thr = jnp.abs(mem_ref - THRESH) < 1e-3
    assert bool(jnp.all(jnp.logical_or(~spk_mismatch, near_thr)))

    print("KERNEL_OK")
</pallas_src>

<mosaic_0001>
module attributes {stable_mosaic.version = 11 : i64} {
  func.func @_syn_kernel(%arg0: i32, %arg1: i32, %arg2: memref<2x16x100xf32, #tpu.memory_space<vmem>>, %arg3: memref<2x16x100xf32, #tpu.memory_space<vmem>>, %arg4: memref<100x3xf32, #tpu.memory_space<vmem>>, %arg5: memref<1x3xf32, #tpu.memory_space<vmem>>, %arg6: memref<16x16xf32, #tpu.memory_space<vmem>>, %arg7: memref<16x1xf32, #tpu.memory_space<vmem>>, %arg8: memref<1x16x6xf32, #tpu.memory_space<vmem>>, %arg9: memref<1x16x6xf32, #tpu.memory_space<vmem>>, %arg10: memref<16x6xf32, #tpu.memory_space<vmem>>, %arg11: memref<1x6xf32, #tpu.memory_space<vmem>>, %arg12: memref<1x6xf32, #tpu.memory_space<vmem>>, %arg13: memref<1x6xf32, #tpu.memory_space<vmem>>) attributes {dimension_semantics = [#tpu.dimension_semantics<parallel>, #tpu.dimension_semantics<arbitrary>], iteration_bounds = array<i64: 1, 3>, scalar_prefetch = 0 : i64, scratch_operands = 4 : i64, tpu.core_type = #tpu.core_type<tc>, window_params = [{transform_indices = @transform_0, window_bounds = array<i64: 2, 16, 100>}, {transform_indices = @transform_1, window_bounds = array<i64: 2, 16, 100>}, {pipeline_mode = #tpu.pipeline_mode<synchronous>, transform_indices = @transform_2, window_bounds = array<i64: 100, 3>}, {pipeline_mode = #tpu.pipeline_mode<synchronous>, transform_indices = @transform_3, window_bounds = array<i64: 1, 3>}, {pipeline_mode = #tpu.pipeline_mode<synchronous>, transform_indices = @transform_4, window_bounds = array<i64: 16, 16>}, {pipeline_mode = #tpu.pipeline_mode<synchronous>, transform_indices = @transform_5, window_bounds = array<i64: 16, 1>}, {transform_indices = @transform_6, window_bounds = array<i64: 1, 16, 6>}, {transform_indices = @transform_7, window_bounds = array<i64: 1, 16, 6>}]} {
    %c0_i32 = arith.constant 0 : i32
    %0 = arith.cmpi eq, %arg1, %c0_i32 : i32
    %1 = arith.extui %0 : i1 to i32
    %c0_i32_0 = arith.constant 0 : i32
    %2 = arith.cmpi ne, %1, %c0_i32_0 : i32
    scf.if %2 {
      %cst_50 = arith.constant 0.000000e+00 : f32
      %55 = vector.broadcast %cst_50 : f32 to vector<1x6xf32>
      %c0_51 = arith.constant 0 : index
      %c0_52 = arith.constant 0 : index
      %56 = vector.load %arg11[%c0_51, %c0_52] : memref<1x6xf32, #tpu.memory_space<vmem>>, vector<1x6xf32>
      tpu.vector_store %arg11[%c0_51, %c0_52], %55 {strides = array<i32>} : memref<1x6xf32, #tpu.memory_space<vmem>>, vector<1x6xf32>,
      %cst_53 = arith.constant 0.000000e+00 : f32
      %57 = vector.broadcast %cst_53 : f32 to vector<1x6xf32>
      %c0_54 = arith.constant 0 : index
      %c0_55 = arith.constant 0 : index
      %58 = vector.load %arg12[%c0_54, %c0_55] : memref<1x6xf32, #tpu.memory_space<vmem>>, vector<1x6xf32>
      tpu.vector_store %arg12[%c0_54, %c0_55], %57 {strides = array<i32>} : memref<1x6xf32, #tpu.memory_space<vmem>>, vector<1x6xf32>,
      %cst_56 = arith.constant 0.000000e+00 : f32
      %59 = vector.broadcast %cst_56 : f32 to vector<1x6xf32>
      %c0_57 = arith.constant 0 : index
      %c0_58 = arith.constant 0 : index
      %60 = vector.load %arg13[%c0_57, %c0_58] : memref<1x6xf32, #tpu.memory_space<vmem>>, vector<1x6xf32>
      tpu.vector_store %arg13[%c0_57, %c0_58], %59 {strides = array<i32>} : memref<1x6xf32, #tpu.memory_space<vmem>>, vector<1x6xf32>,
    } else {
    }
    %c0 = arith.constant 0 : index
    %c0_1 = arith.constant 0 : index
    %c0_2 = arith.constant 0 : index
    %3 = vector.load %arg3[%c0, %c0_1, %c0_2] : memref<2x16x100xf32, #tpu.memory_space<vmem>>, vector<1x16x100xf32>
    %4 = vector.shape_cast %3 : vector<1x16x100xf32> to vector<16x100xf32>
    %c0_3 = arith.constant 0 : index
    %c0_4 = arith.constant 0 : index
    %c0_5 = arith.constant 0 : index
    %5 = vector.load %arg2[%c0_3, %c0_4, %c0_5] : memref<2x16x100xf32, #tpu.memory_space<vmem>>, vector<1x16x100xf32>
    %6 = vector.shape_cast %5 : vector<1x16x100xf32> to vector<16x100xf32>
    %cst = arith.constant 0.000000e+00 : f32
    %cst_6 = arith.constant 1.000000e+00 : f32
    %7 = vector.broadcast %cst : f32 to vector<16x100xf32>
    %8 = arith.maximumf %7, %6 : vector<16x100xf32>
    %9 = vector.broadcast %cst_6 : f32 to vector<16x100xf32>
    %10 = arith.minimumf %9, %8 : vector<16x100xf32>
    %11 = arith.cmpf olt, %4, %10 : vector<16x100xf32>
    %12 = arith.extui %11 : vector<16x100xi1> to vector<16x100xi32>
    %13 = arith.sitofp %12 : vector<16x100xi32> to vector<16x100xf32>
    %c0_7 = arith.constant 0 : index
    %c0_8 = arith.constant 0 : index
    %14 = vector.load %arg4[%c0_7, %c0_8] : memref<100x3xf32, #tpu.memory_space<vmem>>, vector<100x3xf32>
    %cst_9 = arith.constant dense<0.000000e+00> : vector<16x3xf32>
    %15 = tpu.matmul %13, %14, %cst_9 {dimension_numbers = #tpu.dot_dimension_numbers<[1], [0], [0], [1], [0, 0, 1, 1], [], []>} : vector<16x100xf32>, vector<100x3xf32>, vector<16x3xf32> -> vector<16x3xf32>
    %c0_10 = arith.constant 0 : index
    %c0_11 = arith.constant 0 : index
    %16 = vector.load %arg5[%c0_10, %c0_11] : memref<1x3xf32, #tpu.memory_space<vmem>>, vector<1x3xf32>
    %17 = vector.broadcast %16 : vector<1x3xf32> to vector<16x3xf32>
    %18 = arith.addf %15, %17 : vector<16x3xf32>
    %c0_12 = arith.constant 0 : index
    %c0_13 = arith.constant 0 : index
    %19 = vector.load %arg10[%c0_12, %c0_13] : memref<16x6xf32, #tpu.memory_space<vmem>>, vector<16x3xf32>
    tpu.vector_store %arg10[%c0_12, %c0_13], %18 {strides = array<i32>} : memref<16x6xf32, #tpu.memory_space<vmem>>, vector<16x3xf32>,
    %c1 = arith.constant 1 : index
    %c0_14 = arith.constant 0 : index
    %c0_15 = arith.constant 0 : index
    %20 = vector.load %arg3[%c1, %c0_14, %c0_15] : memref<2x16x100xf32, #tpu.memory_space<vmem>>, vector<1x16x100xf32>
    %21 = vector.shape_cast %20 : vector<1x16x100xf32> to vector<16x100xf32>
    %c1_16 = arith.constant 1 : index
    %c0_17 = arith.constant 0 : index
    %c0_18 = arith.constant 0 : index
    %22 = vector.load %arg2[%c1_16, %c0_17, %c0_18] : memref<2x16x100xf32, #tpu.memory_space<vmem>>, vector<1x16x100xf32>
    %23 = vector.shape_cast %22 : vector<1x16x100xf32> to vector<16x100xf32>
    %cst_19 = arith.constant 0.000000e+00 : f32
    %cst_20 = arith.constant 1.000000e+00 : f32
    %24 = vector.broadcast %cst_19 : f32 to vector<16x100xf32>
    %25 = arith.maximumf %24, %23 : vector<16x100xf32>
    %26 = vector.broadcast %cst_20 : f32 to vector<16x100xf32>
    %27 = arith.minimumf %26, %25 : vector<16x100xf32>
    %28 = arith.cmpf olt, %21, %27 : vector<16x100xf32>
    %29 = arith.extui %28 : vector<16x100xi1> to vector<16x100xi32>
    %30 = arith.sitofp %29 : vector<16x100xi32> to vector<16x100xf32>
    %c0_21 = arith.constant 0 : index
    %c0_22 = arith.constant 0 : index
    %31 = vector.load %arg4[%c0_21, %c0_22] : memref<100x3xf32, #tpu.memory_space<vmem>>, vector<100x3xf32>
    %cst_23 = arith.constant dense<0.000000e+00> : vector<16x3xf32>
    %32 = tpu.matmul %30, %31, %cst_23 {dimension_numbers = #tpu.dot_dimension_numbers<[1], [0], [0], [1], [0, 0, 1, 1], [], []>} : vector<16x100xf32>, vector<100x3xf32>, vector<16x3xf32> -> vector<16x3xf32>
    %c0_24 = arith.constant 0 : index
    %c0_25 = arith.constant 0 : index
    %33 = vector.load %arg5[%c0_24, %c0_25] : memref<1x3xf32, #tpu.memory_space<vmem>>, vector<1x3xf32>
    %34 = vector.broadcast %33 : vector<1x3xf32> to vector<16x3xf32>
    %35 = arith.addf %32, %34 : vector<16x3xf32>
    %c0_26 = arith.constant 0 : index
    %c3 = arith.constant 3 : index
    %36 = vector.load %arg10[%c0_26, %c3] : memref<16x6xf32, #tpu.memory_space<vmem>>, vector<16x3xf32>
    tpu.vector_store %arg10[%c0_26, %c3], %35 {strides = array<i32>} : memref<16x6xf32, #tpu.memory_space<vmem>>, vector<16x3xf32>,
    %c0_27 = arith.constant 0 : index
    %c0_28 = arith.constant 0 : index
    %37 = vector.load %arg6[%c0_27, %c0_28] : memref<16x16xf32, #tpu.memory_space<vmem>>, vector<16x16xf32>
    %c0_29 = arith.constant 0 : index
    %c0_30 = arith.constant 0 : index
    %38 = vector.load %arg10[%c0_29, %c0_30] : memref<16x6xf32, #tpu.memory_space<vmem>>, vector<16x6xf32>
    %cst_31 = arith.constant dense<0.000000e+00> : vector<16x6xf32>
    %39 = tpu.matmul %37, %38, %cst_31 {dimension_numbers = #tpu.dot_dimension_numbers<[1], [0], [0], [1], [0, 0, 1, 1], [], []>} : vector<16x16xf32>, vector<16x6xf32>, vector<16x6xf32> -> vector<16x6xf32>
    %c0_32 = arith.constant 0 : index
    %c0_33 = arith.constant 0 : index
    %40 = vector.load %arg7[%c0_32, %c0_33] : memref<16x1xf32, #tpu.memory_space<vmem>>, vector<16x1xf32>
    %c0_34 = arith.constant 0 : index
    %c0_35 = arith.constant 0 : index
    %41 = vector.load %arg11[%c0_34, %c0_35] : memref<1x6xf32, #tpu.memory_space<vmem>>, vector<1x6xf32>
    %42 = vector.broadcast %40 : vector<16x1xf32> to vector<16x6xf32>
    %43 = vector.broadcast %41 : vector<1x6xf32> to vector<16x6xf32>
    %44 = arith.mulf %42, %43 : vector<16x6xf32>
    %45 = arith.addf %39, %44 : vector<16x6xf32>
    %c0_36 = arith.constant 0 : index
    %c0_37 = arith.constant 0 : index
    %46 = vector.load %arg10[%c0_36, %c0_37] : memref<16x6xf32, #tpu.memory_space<vmem>>, vector<16x6xf32>
    tpu.vector_store %arg10[%c0_36, %c0_37], %45 {strides = array<i32>} : memref<16x6xf32, #tpu.memory_space<vmem>>, vector<16x6xf32>,
    %47 = vector.extract_strided_slice %45 {offsets = [15, 0], sizes = [1, 6], strides = [1, 1]} : vector<16x6xf32> to vector<1x6xf32>
    %c0_38 = arith.constant 0 : index
    %c0_39 = arith.constant 0 : index
    %48 = vector.load %arg11[%c0_38, %c0_39] : memref<1x6xf32, #tpu.memory_space<vmem>>, vector<1x6xf32>
    tpu.vector_store %arg11[%c0_38, %c0_39], %47 {strides = array<i32>} : memref<1x6xf32, #tpu.memory_space<vmem>>, vector<1x6xf32>,
    %c0_40 = arith.constant 0 : index
    %c0_41 = arith.constant 0 : index
    %49 = vector.load %arg12[%c0_40, %c0_41] : memref<1x6xf32, #tpu.memory_space<vmem>>, vector<1x6xf32>
    %c0_42 = arith.constant 0 : index
    %c0_43 = arith.constant 0 : index
    %50 = vector.load %arg13[%c0_42, %c0_43] : memref<1x6xf32, #tpu.memory_space<vmem>>, vector<1x6xf32>
    %c0_i32_44 = arith.constant 0 : i32
    %c2_i32 = arith.constant 2 : i32
    %51 = arith.addi %c0_i32_44, %c2_i32 : i32
    %c1_i32 = arith.constant 1 : i32
    %52:2 = scf.for %arg14 = %c0_i32_44 to %51 step %c1_i32 iter_args(%arg15 = %49, %arg16 = %50) -> (vector<1x6xf32>, vector<1x6xf32>)  : i32 {
      %c8_i32 = arith.constant 8 : i32
      %55 = arith.muli %arg14, %c8_i32 : i32
      %56 = tpu.assume_multiple %55, 8 : i32
      %57 = arith.index_cast %56 : i32 to index
      %c0_50 = arith.constant 0 : index
      %58 = vector.load %arg10[%57, %c0_50] : memref<16x6xf32, #tpu.memory_space<vmem>>, vector<8x6xf32>
      %cst_51 = arith.constant 8.500000e-01 : f32
      %59 = vector.broadcast %cst_51 : f32 to vector<1x6xf32>
      %60 = arith.mulf %59, %arg15 : vector<1x6xf32>
      %61 = vector.extract_strided_slice %58 {offsets = [0, 0], sizes = [1, 6], strides = [1, 1]} : vector<8x6xf32> to vector<1x6xf32>
      %62 = arith.addf %60, %61 : vector<1x6xf32>
      %cst_52 = arith.constant 1.000000e+00 : f32
      %63 = vector.broadcast %cst_52 : f32 to vector<1x6xf32>
      %64 = arith.mulf %arg16, %63 : vector<1x6xf32>
      %65 = arith.subf %62, %64 : vector<1x6xf32>
      %cst_53 = arith.constant 1.000000e+00 : f32
      %66 = vector.broadcast %cst_53 : f32 to vector<1x6xf32>
      %67 = arith.cmpf ogt, %65, %66 : vector<1x6xf32>
      %68 = arith.extui %67 : vector<1x6xi1> to vector<1x6xi32>
      %69 = arith.sitofp %68 : vector<1x6xi32> to vector<1x6xf32>
      %cst_54 = arith.constant 8.500000e-01 : f32
      %70 = vector.broadcast %cst_54 : f32 to vector<1x6xf32>
      %71 = arith.mulf %70, %65 : vector<1x6xf32>
      %72 = vector.extract_strided_slice %58 {offsets = [1, 0], sizes = [1, 6], strides = [1, 1]} : vector<8x6xf32> to vector<1x6xf32>
      %73 = arith.addf %71, %72 : vector<1x6xf32>
      %cst_55 = arith.constant 1.000000e+00 : f32
      %74 = vector.broadcast %cst_55 : f32 to vector<1x6xf32>
      %75 = arith.mulf %69, %74 : vector<1x6xf32>
      %76 = arith.subf %73, %75 : vector<1x6xf32>
      %cst_56 = arith.constant 1.000000e+00 : f32
      %77 = vector.broadcast %cst_56 : f32 to vector<1x6xf32>
      %78 = arith.cmpf ogt, %76, %77 : vector<1x6xf32>
      %79 = arith.extui %78 : vector<1x6xi1> to vector<1x6xi32>
      %80 = arith.sitofp %79 : vector<1x6xi32> to vector<1x6xf32>
      %cst_57 = arith.constant 8.500000e-01 : f32
      %81 = vector.broadcast %cst_57 : f32 to vector<1x6xf32>
      %82 = arith.mulf %81, %76 : vector<1x6xf32>
      %83 = vector.extract_strided_slice %58 {offsets = [2, 0], sizes = [1, 6], strides = [1, 1]} : vector<8x6xf32> to vector<1x6xf32>
      %84 = arith.addf %82, %83 : vector<1x6xf32>
      %cst_58 = arith.constant 1.000000e+00 : f32
      %85 = vector.broadcast %cst_58 : f32 to vector<1x6xf32>
      %86 = arith.mulf %80, %85 : vector<1x6xf32>
      %87 = arith.subf %84, %86 : vector<1x6xf32>
      %cst_59 = arith.constant 1.000000e+00 : f32
      %88 = vector.broadcast %cst_59 : f32 to vector<1x6xf32>
      %89 = arith.cmpf ogt, %87, %88 : vector<1x6xf32>
      %90 = arith.extui %89 : vector<1x6xi1> to vector<1x6xi32>
      %91 = arith.sitofp %90 : vector<1x6xi32> to vector<1x6xf32>
      %cst_60 = arith.constant 8.500000e-01 : f32
      %92 = vector.broadcast %cst_60 : f32 to vector<1x6xf32>
      %93 = arith.mulf %92, %87 : vector<1x6xf32>
      %94 = vector.extract_strided_slice %58 {offsets = [3, 0], sizes = [1, 6], strides = [1, 1]} : vector<8x6xf32> to vector<1x6xf32>
      %95 = arith.addf %93, %94 : vector<1x6xf32>
      %cst_61 = arith.constant 1.000000e+00 : f32
      %96 = vector.broadcast %cst_61 : f32 to vector<1x6xf32>
      %97 = arith.mulf %91, %96 : vector<1x6xf32>
      %98 = arith.subf %95, %97 : vector<1x6xf32>
      %cst_62 = arith.constant 1.000000e+00 : f32
      %99 = vector.broadcast %cst_62 : f32 to vector<1x6xf32>
      %100 = arith.cmpf ogt, %98, %99 : vector<1x6xf32>
      %101 = arith.extui %100 : vector<1x6xi1> to vector<1x6xi32>
      %102 = arith.sitofp %101 : vector<1x6xi32> to vector<1x6xf32>
      %cst_63 = arith.constant 8.500000e-01 : f32
      %103 = vector.broadcast %cst_63 : f32 to vector<1x6xf32>
      %104 = arith.mulf %103, %98 : vector<1x6xf32>
      %105 = vector.extract_strided_slice %58 {offsets = [4, 0], sizes = [1, 6], strides = [1, 1]} : vector<8x6xf32> to vector<1x6xf32>
      %106 = arith.addf %104, %105 : vector<1x6xf32>
      %cst_64 = arith.constant 1.000000e+00 : f32
      %107 = vector.broadcast %cst_64 : f32 to vector<1x6xf32>
      %108 = arith.mulf %102, %107 : vector<1x6xf32>
      %109 = arith.subf %106, %108 : vector<1x6xf32>
      %cst_65 = arith.constant 1.000000e+00 : f32
      %110 = vector.broadcast %cst_65 : f32 to vector<1x6xf32>
      %111 = arith.cmpf ogt, %109, %110 : vector<1x6xf32>
      %112 = arith.extui %111 : vector<1x6xi1> to vector<1x6xi32>
      %113 = arith.sitofp %112 : vector<1x6xi32> to vector<1x6xf32>
      %cst_66 = arith.constant 8.500000e-01 : f32
      %114 = vector.broadcast %cst_66 : f32 to vector<1x6xf32>
      %115 = arith.mulf %114, %109 : vector<1x6xf32>
      %116 = vector.extract_strided_slice %58 {offsets = [5, 0], sizes = [1, 6], strides = [1, 1]} : vector<8x6xf32> to vector<1x6xf32>
      %117 = arith.addf %115, %116 : vector<1x6xf32>
      %cst_67 = arith.constant 1.000000e+00 : f32
      %118 = vector.broadcast %cst_67 : f32 to vector<1x6xf32>
      %119 = arith.mulf %113, %118 : vector<1x6xf32>
      %120 = arith.subf %117, %119 : vector<1x6xf32>
      %cst_68 = arith.constant 1.000000e+00 : f32
      %121 = vector.broadcast %cst_68 : f32 to vector<1x6xf32>
      %122 = arith.cmpf ogt, %120, %121 : vector<1x6xf32>
      %123 = arith.extui %122 : vector<1x6xi1> to vector<1x6xi32>
      %124 = arith.sitofp %123 : vector<1x6xi32> to vector<1x6xf32>
      %cst_69 = arith.constant 8.500000e-01 : f32
      %125 = vector.broadcast %cst_69 : f32 to vector<1x6xf32>
      %126 = arith.mulf %125, %120 : vector<1x6xf32>
      %127 = vector.extract_strided_slice %58 {offsets = [6, 0], sizes = [1, 6], strides = [1, 1]} : vector<8x6xf32> to vector<1x6xf32>
      %128 = arith.addf %126, %127 : vector<1x6xf32>
      %cst_70 = arith.constant 1.000000e+00 : f32
      %129 = vector.broadcast %cst_70 : f32 to vector<1x6xf32>
      %130 = arith.mulf %124, %129 : vector<1x6xf32>
      %131 = arith.subf %128, %130 : vector<1x6xf32>
      %cst_71 = arith.constant 1.000000e+00 : f32
      %132 = vector.broadcast %cst_71 : f32 to vector<1x6xf32>
      %133 = arith.cmpf ogt, %131, %132 : vector<1x6xf32>
      %134 = arith.extui %133 : vector<1x6xi1> to vector<1x6xi32>
      %135 = arith.sitofp %134 : vector<1x6xi32> to vector<1x6xf32>
      %cst_72 = arith.constant 8.500000e-01 : f32
      %136 = vector.broadcast %cst_72 : f32 to vector<1x6xf32>
      %137 = arith.mulf %136, %131 : vector<1x6xf32>
      %138 = vector.extract_strided_slice %58 {offsets = [7, 0], sizes = [1, 6], strides = [1, 1]} : vector<8x6xf32> to vector<1x6xf32>
      %139 = arith.addf %137, %138 : vector<1x6xf32>
      %cst_73 = arith.constant 1.000000e+00 : f32
      %140 = vector.broadcast %cst_73 : f32 to vector<1x6xf32>
      %141 = arith.mulf %135, %140 : vector<1x6xf32>
      %142 = arith.subf %139, %141 : vector<1x6xf32>
      %cst_74 = arith.constant 1.000000e+00 : f32
      %143 = vector.broadcast %cst_74 : f32 to vector<1x6xf32>
      %144 = arith.cmpf ogt, %142, %143 : vector<1x6xf32>
      %145 = arith.extui %144 : vector<1x6xi1> to vector<1x6xi32>
      %146 = arith.sitofp %145 : vector<1x6xi32> to vector<1x6xf32>
      %147 = tpu.concatenate %69, %80, %91, %102, %113, %124, %135, %146 in 0 : vector<1x6xf32>, vector<1x6xf32>, vector<1x6xf32>, vector<1x6xf32>, vector<1x6xf32>, vector<1x6xf32>, vector<1x6xf32>, vector<1x6xf32> -> vector<8x6xf32>
      %c0_75 = arith.constant 0 : index
      %148 = arith.index_cast %56 : i32 to index
      %c0_76 = arith.constant 0 : index
      %149 = vector.load %arg8[%c0_75, %148, %c0_76] : memref<1x16x6xf32, #tpu.memory_space<vmem>>, vector<1x8x6xf32>
      %150 = vector.shape_cast %149 : vector<1x8x6xf32> to vector<8x6xf32>
      %151 = vector.shape_cast %147 : vector<8x6xf32> to vector<1x8x6xf32>
      tpu.vector_store %arg8[%c0_75, %148, %c0_76], %151 {strides = array<i32>} : memref<1x16x6xf32, #tpu.memory_space<vmem>>, vector<1x8x6xf32>,
      %152 = tpu.concatenate %65, %76, %87, %98, %109, %120, %131, %142 in 0 : vector<1x6xf32>, vector<1x6xf32>, vector<1x6xf32>, vector<1x6xf32>, vector<1x6xf32>, vector<1x6xf32>, vector<1x6xf32>, vector<1x6xf32> -> vector<8x6xf32>
      %c0_77 = arith.constant 0 : index
      %153 = arith.index_cast %56 : i32 to index
      %c0_78 = arith.constant 0 : index
      %154 = vector.load %arg9[%c0_77, %153, %c0_78] : memref<1x16x6xf32, #tpu.memory_space<vmem>>, vector<1x8x6xf32>
      %155 = vector.shape_cast %154 : vector<1x8x6xf32> to vector<8x6xf32>
      %156 = vector.shape_cast %152 : vector<8x6xf32> to vector<1x8x6xf32>
      tpu.vector_store %arg9[%c0_77, %153, %c0_78], %156 {strides = array<i32>} : memref<1x16x6xf32, #tpu.memory_space<vmem>>, vector<1x8x6xf32>,
      scf.yield %142, %146 : vector<1x6xf32>, vector<1x6xf32>
    }
    %c2_i32_45 = arith.constant 2 : i32
    %c0_46 = arith.constant 0 : index
    %c0_47 = arith.constant 0 : index
    %53 = vector.load %arg12[%c0_46, %c0_47] : memref<1x6xf32, #tpu.memory_space<vmem>>, vector<1x6xf32>
    tpu.vector_store %arg12[%c0_46, %c0_47], %52#0 {strides = array<i32>} : memref<1x6xf32, #tpu.memory_space<vmem>>, vector<1x6xf32>,
    %c0_48 = arith.constant 0 : index
    %c0_49 = arith.constant 0 : index
    %54 = vector.load %arg13[%c0_48, %c0_49] : memref<1x6xf32, #tpu.memory_space<vmem>>, vector<1x6xf32>
    tpu.vector_store %arg13[%c0_48, %c0_49], %52#1 {strides = array<i32>} : memref<1x6xf32, #tpu.memory_space<vmem>>, vector<1x6xf32>,
    return
  }
  func.func @transform_0(%arg0: i32, %arg1: i32) -> (i32, i32, i32) {
    %c0_i32 = arith.constant 0 : i32
    %c0_i32_0 = arith.constant 0 : i32
    return %arg0, %arg1, %c0_i32 : i32, i32, i32
  }
  func.func @transform_1(%arg0: i32, %arg1: i32) -> (i32, i32, i32) {
    %c0_i32 = arith.constant 0 : i32
    %c0_i32_0 = arith.constant 0 : i32
    return %arg0, %arg1, %c0_i32 : i32, i32, i32
  }
  func.func @transform_2(%arg0: i32, %arg1: i32) -> (i32, i32) {
    %c0_i32 = arith.constant 0 : i32
    %c0_i32_0 = arith.constant 0 : i32
    %c0_i32_1 = arith.constant 0 : i32
    return %c0_i32, %c0_i32_0 : i32, i32
  }
  func.func @transform_3(%arg0: i32, %arg1: i32) -> (i32, i32) {
    %c0_i32 = arith.constant 0 : i32
    %c0_i32_0 = arith.constant 0 : i32
    %c0_i32_1 = arith.constant 0 : i32
    return %c0_i32, %c0_i32_0 : i32, i32
  }
  func.func @transform_4(%arg0: i32, %arg1: i32) -> (i32, i32) {
    %c0_i32 = arith.constant 0 : i32
    %c0_i32_0 = arith.constant 0 : i32
    %c0_i32_1 = arith.constant 0 : i32
    return %c0_i32, %c0_i32_0 : i32, i32
  }
  func.func @transform_5(%arg0: i32, %arg1: i32) -> (i32, i32) {
    %c0_i32 = arith.constant 0 : i32
    %c0_i32_0 = arith.constant 0 : i32
    %c0_i32_1 = arith.constant 0 : i32
    return %c0_i32, %c0_i32_0 : i32, i32
  }
  func.func @transform_6(%arg0: i32, %arg1: i32) -> (i32, i32, i32) {
    %c0_i32 = arith.constant 0 : i32
    %c0_i32_0 = arith.constant 0 : i32
    return %arg0, %arg1, %c0_i32 : i32, i32, i32
  }
  func.func @transform_7(%arg0: i32, %arg1: i32) -> (i32, i32, i32) {
    %c0_i32 = arith.constant 0 : i32
    %c0_i32_0 = arith.constant 0 : i32
    return %arg0, %arg1, %c0_i32 : i32, i32, i32
  }
}

</mosaic_0001>

<bundles_post_ra>
// kernel: syn_network_forward.1
= control target key start
LH: loop header
LB: loop body
LE: loop exit
PB: predicated region body
PF: predicated region fallthrough
CT: control target
= control target key end

     0   :  { %13 = vsyncpa [#allocation8], 0  ;;  %s1900_s0 = inlined_call_operand.vmem [shape: f32[2,48,100], index: 0, kind: input, shape index: {}]   ;;  %s1901_s1 = inlined_call_operand.hbm [shape: f32[2,48,100], index: 1, kind: input, shape index: {}]   ;;  %s1902_s2 = inlined_call_operand.vmem [shape: f32[100,3], index: 2, kind: input, shape index: {}]   ;;  %s1903_s3 = inlined_call_operand.vmem [shape: f32[1,3], index: 3, kind: input, shape index: {}]   ;;  %s1904_s4 = inlined_call_operand.vmem [shape: f32[16,16], index: 4, kind: input, shape index: {}]   ;;  %s1905_s5 = inlined_call_operand.vmem [shape: f32[16,1], index: 5, kind: input, shape index: {}]   ;;  %s1906_s6 = inlined_call_operand.vmem [shape: f32[1,48,6], index: 6, kind: output, shape index: {0}]   ;;  %s1907_s7 = inlined_call_operand.vmem [shape: f32[1,48,6], index: 7, kind: output, shape index: {1}]  }
   0x1   :  { %15 = vsyncpa [#allocation8 + $0x1], 0  ;;  %s1665_s24 = smov 0   ;;  %s1667_s25 = smov 0  }
   0x2   :  { %s1669_s26 = smov 0   ;;  %s1671_s27 = smov 0  }
   0x3   :  { %s1673_s28 = smov 0   ;;  %s1675_s29 = smov 0  }
   0x4 LB: > { %s1238_s30 = sadd.s32 4294967295, %s1599_s29   ;;  %s30_s8 = sadd.s32 1, %s1595_s28  ;;  %s1599_s29 = sphi %s1675_s29, %s21_s29   ;;  %s1595_s28 = sphi %s1673_s28, %s1916_s28   ;;  %s1591_s27 = sphi %s1671_s27, %s1915_s27   ;;  %s1587_s26 = sphi %s1669_s26, %s1914_s26   ;;  %s1583_s25 = sphi %s1667_s25, %s1913_s25   ;;  %s1579_s24 = sphi %s1665_s24, %s1912_s24  }
   0x5   : > { %p31_p0 = scmp.ge.s32.totalorder %s30_s8, 3  ;;  %s42_s9 = sadd.s32 1, %s1587_s26 }
   0x6   : > { %p49_p1 = scmp.ne.s32.totalorder %s1587_s26, %s1583_s25  ;;  %p50_p2 = scmp.eq.s32.totalorder %s1599_s29, 0 }
   0x7   : > { %s1918_s8 = smov (%p31_p0, %s30_s8), 0  ;;  %p83_p4 = scmp.ne.s32.totalorder %s1583_s25, %s1579_s24 }
   0x8   : > { %p1701_p3 = por %p50_p2, %p49_p1  ;;  %s38_s11 = ssub.s32 %s1595_s28, %s1918_s8 }
   0x9   : > { %p84_p5 = scmp.eq.s32.totalorder %s1238_s30, 0  ;;  %p40_p6 = scmp.eq.s32.totalorder %s38_s11, 0 }
   0xa   : > { %p1241_p8 = scmp.ge.s32.totalorder %s1599_s29, 3 }
   0xb   : > { %p1708_p7 = por %p84_p5, %p83_p4 }
   0xc   : > { %s1713_s13 = scalar_select %p40_p6, %s1587_s26, %s42_s9  }
   0xd   : > { %255 = sbr.rel (%p1241_p8) target bundleno = 40 (0x28), region = 32 }
  0x14   : > { %258 = sbr.rel (!%p1701_p3) target bundleno = 27 (0x1b), region = 36  ;;  %s260_s14 = sand.u32 (%p1701_p3), 1, %s1587_s26  }
  0x15   : > { %s1288_s15 = sshll.u32 (%p1701_p3), %s1595_s28, 4  ;;  %s1242_s16 = sshll.u32 (%p1701_p3), %s260_s14, 5 }
  0x16   : > { %s268_s19 = scalar_lea.vmem (%p1701_p3), %s1900_s0, %s1288_s15  ;;  %s262_s20 = scalar_lea.vmem (%p1701_p3), [#allocation6], %s1242_s16 }
  0x17   : > { %v302_v0 = vld [vmem:[%s268_s19] sm:$0xff] (%p1701_p3)  ;;  %v304_v1 = vld [vmem:[%s268_s19 + $0x8] sm:$0xff] (%p1701_p3)  ;;  %v306_v2 = vld [vmem:[%s268_s19 + $0x30] sm:$0xff] (%p1701_p3) }
  0x18   : > { %303 = vst [vmem:[%s262_s20] sm:$0xff] (%p1701_p3), %v302_v0  ;;  %305 = vst [vmem:[%s262_s20 + $0x8] sm:$0xff] (%p1701_p3), %v304_v1  ;;  %v308_v3 = vld [vmem:[%s268_s19 + $0x38] sm:$0xff] (%p1701_p3) }
  0x19   : > { %307 = vst [vmem:[%s262_s20 + $0x10] sm:$0xff] (%p1701_p3), %v306_v2  ;;  %309 = vst [vmem:[%s262_s20 + $0x18] sm:$0xff] (%p1701_p3), %v308_v3 }
  0x1b PF: > { %s316_s21 = sand.u32 1, %s1587_s26   ;;  %s1289_s22 = sshll.u32 %s1595_s28, 8 }
  0x1c   : > { %s1245_s23 = sshll.u32 %s316_s21, 5  ;;  %s329_s9 = scalar_lea.hbm %s1901_s1, %s1289_s22 }
  0x1d   : > { %s1441_s11 = scalar_select %p1701_p3, [#allocation0], [#allocation11] }
  0x1e   : > { %s320_s14 = scalar_lea.vmem [#allocation7], %s1245_s23  ;;  %s1613_s17 = smov 768  }
  0x1f   : > { %s342_s15 = sshll.u32 %s320_s14, 4  ;;  %s334_s16 = sld [smem:[%s1441_s11]]   ;;  %s343_s15 = int_to_ptr.vmem [resolvable:$true] %s342_s15 }
  0x20   : > { %1442 = sst [smem:[#allocation10]] (%p1701_p3), %s1613_s17  ;;  %s1614_s18 = smov 256  }
  0x21   : > { %1443 = sst [smem:[#allocation10 + $0x1]] (%p1701_p3), %s1614_s18  ;;  %s1615_s19 = smov 2  }
  0x22   : > { %1444 = sst [smem:[#allocation10 + $0x2]] (%p1701_p3), %s1615_s19  ;;  %s1616_s20 = smov 128  }
  0x23   : > { %1445 = sst [smem:[#allocation10 + $0x3]] (%p1701_p3), %s1616_s20  ;;  %s1617_s23 = smov 8  }
  0x24   : > { %1446 = sst [smem:[#allocation10 + $0x4]] (%p1701_p3), %s1616_s20  ;;  %s317_s30 = scalar_lea.sflag [#allocation8], %s316_s21 }
  0x25   : > { %s1248_s22 = sshll.u32 %s334_s16, 26  ;;  %1447 = sst [smem:[#allocation10 + $0x5]] (%p1701_p3), %s1617_s23 }
  0x26   : > { %s1249_s24 = sadd.s32 134217728, %s1248_s22  ;;  %s1618_s11 = smov [#allocation9]  }
  0x27   : > { %1448 = dma.general (%p1701_p3), %s329_s9, 512, %s343_s15, %s317_s30, %s1618_s11, [#allocation10], %s1249_s24, 0  }
  0x28 PF: > { %p1250_p9 = scmp.ge.s32.totalorder %s1599_s29, 1  ;;  %p363_p10 = scmp.lt.s32.totalorder %s1599_s29, 4 }
  0x2a   : > { %p364_p11 = pnand %p1250_p9, %p363_p10 }
  0x2b   : > { %s370_s14 = sand.u32 (!%p364_p11), 1, %s1583_s25  }
  0x2c   : > { %367 = sbr.rel (%p364_p11) target bundleno = 714 (0x2ca), region = 78  ;;  %s1251_s17 = sshll.u32 (!%p364_p11), %s370_s14, 5 }
  0x2d   : > { %s1747_s16 = scalar_lea.vmem (!%p364_p11), [#allocation6], %s1251_s17  ;;  %s377_s18 = scalar_lea.sflag (!%p364_p11), [#allocation8], %s370_s14 }
  0x2e   : > { %s1749_s19 = scalar_lea.vmem (!%p364_p11), [#allocation7], %s1251_s17 }
  0x33   : > { %1574 = dma.done.wait (%p1708_p7), %s377_s18, 512  }
  0x34   : > { %1576 = vsyncadd (%p1708_p7), %s377_s18, 4294966784  ;;  %s1253_s10 = sshll.u32 %s1591_s27, 1  ;;  %p1257_p13 = scmp.ne.s32.totalorder %s1591_s27, 0 }
  0x35   : > { %p435_p12 = scmp.lt.s32.totalorder %s1253_s10, 5  ;;  %vm456_vm0 = vcmask (!%p1257_p13), 40960   ;;  %v1619_v4 = vmov (!%p1257_p13), 0.0  }
  0x36   : > { %455 = sbr.rel (%p1257_p13) target bundleno = 61 (0x3d), region = 90  ;;  %457 = vst.msk [vmem:[#allocation3] sm:$0x1] (!%p1257_p13), %vm456_vm0, %v1619_v4  ;;  %458 = vst.msk [vmem:[#allocation4] sm:$0x1] (!%p1257_p13), %vm456_vm0, %v1619_v4 }
  0x37   : > { %s1920_s10 = smov (!%p435_p12, %s1253_s10), 5  ;;  %459 = vst.msk [vmem:[#allocation5] sm:$0x1] (!%p1257_p13), %vm456_vm0, %v1619_v4 }
  0x38   : > { %s1254_s21 = sshll.u32 %s1920_s10, 3 }
  0x39   : > { %s1759_s20 = scalar_lea.vmem %s1906_s6, %s1254_s21  ;;  %s1764_s24 = scalar_lea.vmem %s1907_s7, %s1254_s21 }
  0x3d PF: > { %v599_v5 = vld [vmem:[%s1902_s2] sm:$0xff]  ;;  %v600_v6 = vld [vmem:[%s1902_s2 + $0x8] sm:$0xff]  ;;  %v601_v7 = vld [vmem:[%s1902_s2 + $0x10] sm:$0xff]  ;;  %vm494_vm1 = vcmask 818176   ;;  %v1620_v27 = vmov 0.0   ;;  %vm501_vm4 = vcmask 1043456  }
  0x3e   : > { %v1413_v8 = vpack.c.bf16 %v600_v6, %v599_v5  ;;  %v602_v9 = vld [vmem:[%s1902_s2 + $0x18] sm:$0xff]  ;;  %v603_v11 = vld [vmem:[%s1902_s2 + $0x20] sm:$0xff]  ;;  %v604_v12 = vld [vmem:[%s1902_s2 + $0x28] sm:$0xff]  ;;  %vm580_vm7 = vcmask 23552   ;;  %s1621_s11 = smov 3   ;;  %vm739_vm8 = vcmask 130048  }
  0x3f   : > { %v1417_v10 = vpack.c.bf16 %v602_v9, %v601_v7  ;;  %v1266_v13 = vld [vmem:[%s1747_s16 + $0x10] sm:$0xff]  ;;  %v1421_v14 = vpack.c.bf16 %v604_v12, %v603_v11  ;;  %v605_v15 = vld [vmem:[%s1902_s2 + $0x30] sm:$0xff]  ;;  %v606_v17 = vld [vmem:[%s1902_s2 + $0x38] sm:$0xff]  ;;  %v1622_v57 = vmov 0   ;;  %vm711_vm9 = vcmask 48152  }
  0x40   : > { %1414 = vmatprep.subr.bf16.mxu1 %v1413_v8  ;;  %1390 = vmatprep.subr.bf16.mxu0 %v1413_v8  ;;  %v589_v16 = vmax.f32 %v1266_v13, 0.0  ;;  %v1264_v18 = vld [vmem:[%s1749_s19 + $0x10] sm:$0xff]  ;;  %v462_v19 = vld [vmem:[%s1747_s16] sm:$0xff]  ;;  %v1425_v23 = vpack.c.bf16 %v606_v17, %v605_v15  ;;  %v1267_v29 = vld [vmem:[%s1747_s16 + $0x18] sm:$0xff]  ;;  %vm821_vm10 = vcmask 48128   ;;  %vm824_vm11 = vcmask 48135  }
  0x41   : > { %1416 = vmatpush3.bf16.msra.mxu1 %v1413_v8  ;;  %1392 = vmatpush3.bf16.msra.mxu0 %v1413_v8  ;;  %v464_v21 = vmax.f32 %v462_v19, 0.0  ;;  %v460_v22 = vld [vmem:[%s1749_s19] sm:$0xff]  ;;  %v607_v25 = vld [vmem:[%s1902_s2 + $0x40] sm:$0xff]  ;;  %v608_v26 = vld [vmem:[%s1902_s2 + $0x48] sm:$0xff]  ;;  %v590_v35 = vmax.f32 %v1267_v29, 0.0 }
  0x42   : > { %1418 = vmatprep.subr.bf16.mxu1 %v1417_v10  ;;  %1394 = vmatprep.subr.bf16.mxu0 %v1417_v10  ;;  %v591_v20 = vmin.f32 %v589_v16, 1.0  ;;  %v463_v31 = vld [vmem:[%s1747_s16 + $0x8] sm:$0xff]  ;;  %v1429_v32 = vpack.c.bf16 %v608_v26, %v607_v25  ;;  %v609_v33 = vld [vmem:[%s1902_s2 + $0x50] sm:$0xff]  ;;  %v719_v58 = vld [vmem:[%s1905_s5 + $0x8] sm:$0xff]  ;;  %s1848_s16 = smov 0  }
  0x43   : > { %v466_v24 = vmin.f32 %v464_v21, 1.0  ;;  %v610_v34 = vld [vmem:[%s1902_s2 + $0x58] sm:$0xff]  ;;  %v465_v36 = vmax.f32 %v463_v31, 0.0  ;;  %v592_v38 = vmin.f32 %v590_v35, 1.0  ;;  %v1265_v40 = vld [vmem:[%s1749_s19 + $0x18] sm:$0xff]  ;;  %v714_v55 = vld [vmem:[%s1904_s4] sm:$0xff]  ;;  %1534 = vset.pattern.permute.xlu1 %v1622_v57  ;;  %1535 = vset.pattern.permute.xlu0 %v1622_v57 }
  0x44   : > { %vm593_vm2 = vcmp.lt.f32.partialorder %v1264_v18, %v591_v20  ;;  %v1433_v37 = vpack.c.bf16 %v610_v34, %v609_v33  ;;  %v461_v41 = vld [vmem:[%s1749_s19 + $0x8] sm:$0xff]  ;;  %v715_v0 = vld [vmem:[%s1904_s4 + $0x8] sm:$0xff]  ;;  %v826_v1 = vld [vmem:[#allocation4] sm:$0x1]  }
  0x45   : > { %1420 = vmatpush3.bf16.msra.mxu1 %v1417_v10  ;;  %1396 = vmatpush3.bf16.msra.mxu0 %v1417_v10  ;;  %v1268_v28 = vsel %vm593_vm2, 1.0, %v1620_v27  ;;  %vm468_vm3 = vcmp.lt.f32.partialorder %v460_v22, %v466_v24  ;;  %v467_v39 = vmin.f32 %v465_v36, 1.0  ;;  %v611_v42 = vld [vmem:[%s1902_s2 + $0x60] sm:$0xf]  ;;  %vm594_vm5 = vcmp.lt.f32.partialorder %v1265_v40, %v592_v38  ;;  %v827_v2 = vld [vmem:[#allocation5] sm:$0x1]  }
  0x46   : > { %1422 = vmatprep.subr.bf16.mxu1 %v1421_v14  ;;  %1398 = vmatprep.subr.bf16.mxu0 %v1421_v14  ;;  %v1258_v30 = vsel %vm468_vm3, 1.0, %v1620_v27  ;;  %v486_v43 = vld [vmem:[%s1902_s2 + $0x60] sm:$0xf]  ;;  %v1269_v44 = vsel %vm594_vm5, 1.0, %v1620_v27  ;;  %v1274_v4 = vld [vmem:[#allocation3] ss:$0 sm:$0xff] }
  0x47   : > { %1379 = vmatprep.mubr.msk.f32.mxu1 %vm494_vm1, %v1268_v28  ;;  %1350 = vmatprep.mubr.msk.f32.mxu0 %vm494_vm1, %v1258_v30  ;;  %vm469_vm6 = vcmp.lt.f32.partialorder %v461_v41, %v467_v39  ;;  %v1270_v46 = vld [vmem:[%s1903_s3] ss:$0 sm:$0xff] }
  0x48   : > { %v1259_v45 = vsel %vm469_vm6, 1.0, %v1620_v27  ;;  %v718_v56 = vld [vmem:[%s1905_s5] sm:$0xff] }
  0x49   : > { %1424 = vmatpush3.bf16.msra.mxu1 %v1421_v14  ;;  %1400 = vmatpush3.bf16.msra.mxu0 %v1421_v14 }
  0x4a   : > { %1426 = vmatprep.subr.bf16.mxu1 %v1425_v23  ;;  %1402 = vmatprep.subr.bf16.mxu0 %v1425_v23 }
  0x4b   : > { %723 = vperm.xlu1 %1534, %v718_v56  }
  0x4d   : > { %1428 = vmatpush3.bf16.msra.mxu1 %v1425_v23  ;;  %1404 = vmatpush3.bf16.msra.mxu0 %v1425_v23 }
  0x4e   : > { %1430 = vmatprep.subr.bf16.mxu1 %v1429_v32  ;;  %1406 = vmatprep.subr.bf16.mxu0 %v1429_v32 }
  0x4f   : > { %728 = vperm.xlu1 %1534, %v719_v58  }
  0x51   : > { %1432 = vmatpush3.bf16.msra.mxu1 %v1429_v32  ;;  %1408 = vmatpush3.bf16.msra.mxu0 %v1429_v32 }
  0x52   : > { %1434 = vmatprep.subr.bf16.mxu1 %v1433_v37  ;;  %1410 = vmatprep.subr.bf16.mxu0 %v1433_v37 }
  0x55   : > { %1436 = vmatpush3.bf16.msra.mxu1 %v1433_v37  ;;  %1412 = vmatpush3.bf16.msra.mxu0 %v1433_v37 }
  0x56   : > { %1377 = vmatprep.subr.msk.mxu1 %vm501_vm4, %v611_v42  ;;  %1348 = vmatprep.subr.msk.mxu0 %vm501_vm4, %v486_v43 }
  0x59   : > { %1378 = vmatpush3.msk.msra.mxu1 %vm501_vm4, %v611_v42  ;;  %1349 = vmatpush3.msk.msra.mxu0 %vm501_vm4, %v486_v43 }
  0x5a   : > { %1380 = vmatmul.mubr.msk.f32.vlgmr.msra.gmra.mrb[0].mxu1 %vm494_vm1, %v1269_v44  ;;  %1351 = vmatmul.mubr.msk.f32.vlgmr.msra.gmra.mrb[0].mxu0 %vm494_vm1, %v1259_v45 }
  0x5b   : > { %1386 = vmatprep.mubr.msk.f32.mxu0 %vm739_vm8, %v714_v55 }
  0xca   : > { %v724_v3 = vpop.permute.xlu1 %723 }
  0xcb   : > { %v737_v7 = vmul.f32 %v1274_v4, %v724_v3 }
  0xce   : > { %v729_v5 = vpop.permute.xlu1 %728 }
  0xcf   : > { %v738_v6 = vmul.f32 %v1274_v4, %v729_v5 }
 0x12d   : > { %v1381_v47 = vpop.f32.mrb[0].mxu1  ;;  %v1352_v48 = vpop.f32.mrb[0].mxu0 }
 0x12e   : > { %v694_v49 = vpop.f32.mrb[1].mxu1  ;;  %v577_v50 = vadd.f32 %v1352_v48, %v1270_v46  ;;  %v571_v51 = vpop.f32.mrb[1].mxu0  ;;  %v700_v54 = vadd.f32 %v1381_v47, %v1270_v46 }
 0x12f   : > { %v695_v52 = vadd.f32 %v1270_v46, %v694_v49  ;;  %v572_v53 = vadd.f32 %v1270_v46, %v571_v51 }
 0x130   : > { %582 = vst.msk [vmem:[#allocation2 + $0x8] sm:$0xff] %vm580_vm7, %v577_v50 }
 0x131   : > { %705 = vrot.lane.b32.xlu0 %v695_v52, %s1621_s11  ;;  %581 = vst.msk [vmem:[#allocation2] sm:$0xff] %vm580_vm7, %v572_v53 }
 0x135   : > { %707 = vrot.lane.b32.xlu0 %v700_v54, %s1621_s11 }
 0x1a3   : > { %v706_v59 = vpop.permute.xlu0 %705 }
 0x1a4   : > { %712 = vst.msk [vmem:[#allocation2] sm:$0xff] %vm711_vm9, %v706_v59 }
 0x1a7   : > { %v708_v60 = vpop.permute.xlu0 %707 }
 0x1a8   : > { %713 = vst.msk [vmem:[#allocation2 + $0x8] sm:$0xff] %vm711_vm9, %v708_v60 }
 0x1ab   : > { %v716_v61 = vld [vmem:[#allocation2] sm:$0xff] }
 0x1af   : > { %v717_v62 = vld [vmem:[#allocation2 + $0x8] sm:$0xff] }
 0x1b0   : > { %v1437_v63 = vpack.c.bf16 %v717_v62, %v716_v61 }
 0x1b2   : > { %1438 = vmatprep.subr.bf16.mxu0 %v1437_v63 }
 0x1b3   : > { %1440 = vmatpush3.bf16.msra.mxu0 %v1437_v63 }
 0x1b6   : > { %1387 = vmatmul.mubr.msk.f32.vlgmr.msra.gmra.mrb[2].mxu0 %vm739_vm8, %v715_v0 }
 0x289   : > { %v1388_v8 = vpop.f32.mrb[2].mxu0 }
 0x28a   : > { %v818_v9 = vadd.f32 %v1388_v8, %v738_v6  ;;  %v812_v10 = vpop.f32.mrb[3].mxu0 }
 0x28b   : > { %v813_v11 = vadd.f32 %v812_v10, %v737_v7 }
 0x28c   : > { %823 = vst.msk [vmem:[#allocation2 + $0x8] sm:$0xff] %vm821_vm10, %v818_v9 }
 0x28d   : > { %825 = vst.msk [vmem:[#allocation3 - $0x7] sm:$0x80] %vm824_vm11, %v818_v9 }
 0x28e   : > { %822 = vst.msk [vmem:[#allocation2] sm:$0xff] %vm821_vm10, %v813_v11 }
 0x28f LB: >> { %v1623_v12 = vmov 1966171168   ;;  %v850_v14 = vlaneseq  ;;  %s1856_s22 = sshll.u32 %s1611_s16, 3  ;;  %v839_v15 = vmul.f32 0.85, %v1607_v1  ;;  %v1624_v27 = vmov 0.0   ;;  %s1611_s16 = sphi %s1848_s16, %s833_s16   ;;  %v1607_v1 = vphi %v826_v1, %v1911_v1   ;;  %v1603_v2 = vphi %v827_v2, %v1910_v2  }
 0x290   : >> { %v848_v13 = vunpack.c.l.s4 %v1623_v12  ;;  %s837_s23 = scalar_lea.vmem [#allocation2], %s1856_s22  ;;  %vm986_vm0 = vcmask 1040384   ;;  %vm988_vm2 = vcmask 1041408   ;;  %vm990_vm3 = vcmask 1042432   ;;  %s1050_s12 = scalar_lea.vmem %s1764_s24, %s1856_s22 }
 0x291   : >> { %v851_v17 = vshrl.u32 %v850_v14, 7  ;;  %vm993_vm6 = vcmask 1044480   ;;  %vm995_vm8 = vcmask 1045504   ;;  %vm997_vm9 = vcmask 1046528   ;;  %s999_s19 = scalar_lea.vmem %s1759_s20, %s1856_s22  ;;  %s833_s16 = sadd.s32 1, %s1611_s16  }
 0x292   : >> { %v849_v16 = vunpack.c.0.s8 %v848_v13  ;;  %p830_p0 = scmp.ge.s32.totalorder %s833_s16, 2  }
 0x293   : >> { %v947_v46 = vsub.s32 0, %v851_v17 }
 0x294   : >> { %v852_v20 = vsub.s32 %v849_v16, %v851_v17 }
 0x295   : >> { %v838_v18 = vld [vmem:[%s837_s23] sm:$0xff] }
 0x296   : >> { %v840_v19 = vadd.f32 %v839_v15, %v838_v18  ;;  %v853_v22 = vrot.slane %v838_v18, %v852_v20  ;;  %v892_v35 = vcombine.high %v838_v18, %v838_v18 }
 0x298   : >> { %v841_v21 = vsub.f32 %v840_v19, %v1603_v2  ;;  %v854_v24 = vcombine.high %v853_v22, %v853_v22  ;;  %v861_v25 = vrot.slane %v853_v22, %v852_v20  ;;  %v899_v39 = vrot.slane %v892_v35, %v852_v20 }
 0x29a   : >> { %vm842_vm12 = vcmp.gt.f32.partialorder %v841_v21, 1.0  ;;  %v845_v23 = vmul.f32 0.85, %v841_v21  ;;  %v868_v26 = vrot.slane %v854_v24, %v852_v20  ;;  %v876_v31 = vcombine.high %v861_v25, %v861_v25 }
 0x29b   : >> { %v1278_v28 = vsel %vm842_vm12, 1.0, %v1624_v27  ;;  %v906_v43 = vrot.slane %v899_v39, %v852_v20  ;;  %v914_v45 = vcombine.high %v899_v39, %v899_v39  ;;  %vm1052_vm12 = vcmask (%p830_p0), 40960  }
 0x29c   : >> { %v870_v29 = vadd.f32 %v868_v26, %v845_v23  ;;  %v884_v37 = vcombine.high %v868_v26, %v868_v26 }
 0x29d   : >> { %v921_v50 = vrot.slane %v914_v45, %v852_v20  ;;  %v929_v60 = vcombine.high %v906_v43, %v906_v43 }
 0x29e   : >> { %v871_v30 = vsub.f32 %v870_v29, %v1278_v28 }
 0x29f   : >> { %v937_v9 = vcombine.high %v921_v50, %v921_v50 }
 0x2a0   : >> { %vm872_vm13 = vcmp.gt.f32.partialorder %v871_v30, 1.0  ;;  %v875_v32 = vmul.f32 0.85, %v871_v30  ;;  %v1005_v51 = vrot.slane %v871_v30, %v947_v46 }
 0x2a1   : >> { %v1279_v33 = vsel %vm872_vm13, 1.0, %v1624_v27 }
 0x2a2   : >> { %v878_v34 = vadd.f32 %v876_v31, %v875_v32  ;;  %v948_v53 = vrot.slane %v1279_v33, %v947_v46  ;;  %v1043_v57 = vsel %vm986_vm0, %v841_v21, %v1005_v51 }
 0x2a4   : >> { %v879_v36 = vsub.f32 %v878_v34, %v1279_v33  ;;  %v987_v61 = vsel %vm986_vm0, %v1278_v28, %v948_v53 }
 0x2a6   : >> { %vm880_vm14 = vcmp.gt.f32.partialorder %v879_v36, 1.0  ;;  %v883_v38 = vmul.f32 0.85, %v879_v36  ;;  %v1011_v55 = vrot.slane %v879_v36, %v947_v46 }
 0x2a7   : >> { %v1280_v40 = vsel %vm880_vm14, 1.0, %v1624_v27 }
 0x2a8   : >> { %v886_v41 = vadd.f32 %v884_v37, %v883_v38  ;;  %v954_v58 = vrot.slane %v1280_v40, %v947_v46  ;;  %v1044_v63 = vsel %vm988_vm2, %v1043_v57, %v1011_v55 }
 0x2aa   : >> { %v887_v42 = vsub.f32 %v886_v41, %v1280_v40  ;;  %v989_v3 = vsel %vm988_vm2, %v987_v61, %v954_v58 }
 0x2ac   : >> { %vm888_vm15 = vcmp.gt.f32.partialorder %v887_v42, 1.0  ;;  %v891_v44 = vmul.f32 0.85, %v887_v42  ;;  %v1017_v62 = vrot.slane %v887_v42, %v947_v46 }
 0x2ad   : >> { %v1281_v47 = vsel %vm888_vm15, 1.0, %v1624_v27 }
 0x2ae   : >> { %v908_v48 = vadd.f32 %v906_v43, %v891_v44  ;;  %v960_v1 = vrot.slane %v1281_v47, %v947_v46  ;;  %v1045_v6 = vsel %vm990_vm3, %v1044_v63, %v1017_v62 }
 0x2b0   : >> { %v909_v49 = vsub.f32 %v908_v48, %v1281_v47  ;;  %v991_v10 = vsel %vm990_vm3, %v989_v3, %v960_v1 }
 0x2b2   : >> { %vm910_vm1 = vcmp.gt.f32.partialorder %v909_v49, 1.0  ;;  %v913_v52 = vmul.f32 0.85, %v909_v49  ;;  %v1023_v4 = vrot.slane %v909_v49, %v947_v46 }
 0x2b3   : >> { %v1282_v54 = vsel %vm910_vm1, 1.0, %v1624_v27 }
 0x2b4   : >> { %v923_v56 = vadd.f32 %v921_v50, %v913_v52  ;;  %v966_v7 = vrot.slane %v1282_v54, %v947_v46  ;;  %v1046_v12 = vsel %vm501_vm4, %v1045_v6, %v1023_v4 }
 0x2b6   : >> { %v924_v59 = vsub.f32 %v923_v56, %v1282_v54  ;;  %v992_v16 = vsel %vm501_vm4, %v991_v10, %v966_v7 }
 0x2b8   : >> { %vm925_vm5 = vcmp.gt.f32.partialorder %v924_v59, 1.0  ;;  %v928_v0 = vmul.f32 0.85, %v924_v59  ;;  %v1029_v11 = vrot.slane %v924_v59, %v947_v46 }
 0x2b9   : >> { %v1283_v2 = vsel %vm925_vm5, 1.0, %v1624_v27 }
 0x2ba   : >> { %v931_v5 = vadd.f32 %v929_v60, %v928_v0  ;;  %v972_v14 = vrot.slane %v1283_v2, %v947_v46  ;;  %v1047_v19 = vsel %vm993_vm6, %v1046_v12, %v1029_v11 }
 0x2bc   : >> { %v932_v8 = vsub.f32 %v931_v5, %v1283_v2  ;;  %v994_v22 = vsel %vm993_vm6, %v992_v16, %v972_v14 }
 0x2be   : >> { %vm933_vm7 = vcmp.gt.f32.partialorder %v932_v8, 1.0  ;;  %v936_v13 = vmul.f32 0.85, %v932_v8  ;;  %v1035_v17 = vrot.slane %v932_v8, %v947_v46 }
 0x2bf   : >> { %v1284_v15 = vsel %vm933_vm7, 1.0, %v1624_v27 }
 0x2c0   : >> { %v939_v18 = vadd.f32 %v937_v9, %v936_v13  ;;  %v978_v20 = vrot.slane %v1284_v15, %v947_v46  ;;  %v1048_v23 = vsel %vm995_vm8, %v1047_v19, %v1035_v17 }
 0x2c2   : >> { %v940_v21 = vsub.f32 %v939_v18, %v1284_v15   ;;  %v996_v26 = vsel %vm995_vm8, %v994_v22, %v978_v20 }
 0x2c3   : > { %832 = sbr.rel (!%p830_p0) target bundleno = 655 (0x28f), region = 163 }
 0x2c4   : >> { %vm941_vm11 = vcmp.gt.f32.partialorder %v940_v21, 1.0  ;;  %v1041_v24 = vrot.slane %v940_v21, %v947_v46  ;;  %v1911_v1 = vmov %v940_v21  ;;  %1053 = vst.msk [vmem:[#allocation4] sm:$0x1] (%p830_p0), %vm1052_vm12, %v940_v21 }
 0x2c5   : >> { %v1285_v25 = vsel %vm941_vm11, 1.0, %v1624_v27  }
 0x2c6   : >> { %v984_v28 = vrot.slane %v1285_v25, %v947_v46  ;;  %v1049_v29 = vsel %vm997_vm9, %v1048_v23, %v1041_v24  ;;  %v1910_v2 = vmov %v1285_v25  ;;  %1054 = vst.msk [vmem:[#allocation5] sm:$0x1] (%p830_p0), %vm1052_vm12, %v1285_v25 }
 0x2c7   : >> { %1051 = vst.msk [vmem:[%s1050_s12] sm:$0xff] %vm821_vm10, %v1049_v29 }
 0x2c8   : >> { %v998_v30 = vsel %vm997_vm9, %v996_v26, %v984_v28 }
 0x2c9   : >> { %1000 = vst.msk [vmem:[%s999_s19] sm:$0xff] %vm821_vm10, %v998_v30 }
 0x2ca PF: > { %s21_s29 = sadd.s32 1, %s1599_s29   ;;  %s1912_s24 = smov %s1583_s25 }
 0x2cb   : > { %p18_p1 = scmp.ge.s32.totalorder %s21_s29, 5   ;;  %s1913_s25 = smov %s1587_s26 }
 0x2cc   : > { %s1914_s26 = smov %s1713_s13  ;;  %s1915_s27 = smov %s1595_s28 }
 0x2cd   : > { %s1916_s28 = smov %s1918_s8  ;;  %20 = sbr.rel (!%p18_p1) target bundleno = 4 (0x4), region = 174 }
 0x2d4   :  { %1110 = vsyncpa [#allocation8], 1 }
 0x2d5   :  { %1112 = vsyncpa [#allocation8 + $0x1], 1 }

</bundles_post_ra>
